<compile_context>
chip_gen: v7x
topology: tpu7x:2x2x1
jax: 0.10.0
libtpu: 0.0.40
codegen_flags: <defaults>
</compile_context>

<pallas_src>
import functools

import jax
import jax.numpy as jnp
from jax.experimental import pallas as pl
from jax.experimental.pallas import tpu as pltpu


def _gridmask_kernel(mask_ref, img_ref, out_ref, *, fillcolor):
    # mask_ref: VMEM (1, TW) int32 keep-mask (resident / cheap to re-fetch)
    # img_ref / out_ref: VMEM (TB, TW) blocks of the flattened image
    keep = mask_ref[...] != 0
    img = img_ref[...]
    fill = jnp.asarray(fillcolor, img.dtype)
    out_ref[...] = jnp.where(keep, img, fill)


def _choose_tiles(nc, hw, itemsize, target_block_bytes):
    """Pick (TB rows, TW lanes) per block.

    Multi-MiB blocks, second-to-last dim a multiple of 8 (or the full extent),
    last dim a multiple of 128 (or the full extent).
    """
    row_bytes = hw * itemsize
    if row_bytes <= target_block_bytes:
        # Full-width rows; fuse as many N*C slices as fit the budget.
        tw = hw
        tb = max(1, target_block_bytes // row_bytes)
        if tb >= nc:
            # Whole array fits in one block.  On v7x prefer >= 2 grid steps so
            # both TensorCores get work (near no-op on single-TC v5e/v6e).
            if nc >= 16:
                return ((pl.cdiv(nc, 2) + 7) // 8) * 8, tw
            return nc, tw
        if nc >= 8:
            tb = max(8, (tb // 8) * 8)
        return min(tb, nc), tw
    # A single flattened row exceeds the budget: tile the lane axis too.
    tb = min(8, nc)
    tw = (target_block_bytes // (tb * itemsize) // 128) * 128
    tw = max(128, min(tw, hw))
    return tb, tw


def dynamic_gridmask(img, target, *, d, r, mode=1, fillcolor=0, key=None,
                     block_bytes=8 << 20, vmem_limit_bytes=48 << 20):
    """JAX/Pallas equivalent of DynamicGridMask.forward(img, target)."""
    if mode not in (0, 1):
        raise ValueError("mode must be 0 or 1")
    N, C, H, W = img.shape
    l = int(d * r + 0.5)          # stripe width, as in reference GridMask
    l = max(0, min(l, d))         # clamp degenerate r (l=0: no stripes; l=d: all)

    # "Dynamic" part: random grid offsets in [0, d).  Deterministic given key.
    if key is None:
        st = jnp.zeros((2,), jnp.int32)
    else:
        st = jax.random.randint(key, (2,), 0, d, dtype=jnp.int32)

    # Precompute the (H, W) keep-mask once in plain JAX (separable, O(H+W)
    # index work).  Identical for every image/channel, so the kernel only does
    # one compare + select per vreg.
    rows = jnp.arange(H, dtype=jnp.int32)[:, None]
    cols = jnp.arange(W, dtype=jnp.int32)[None, :]
    stripe = (jnp.mod(rows - st[0], d) < l) | (jnp.mod(cols - st[1], d) < l)
    keep = stripe if mode == 1 else jnp.logical_not(stripe)
    keep_flat = keep.reshape(1, H * W).astype(jnp.int32)

    NC, HW = N * C, H * W
    x = img.reshape(NC, HW)  # lane-dense layout: H*W maps onto the 128-lane axis

    itemsize = jnp.dtype(img.dtype).itemsize
    TB, TW = _choose_tiles(NC, HW, itemsize, block_bytes)
    grid = (pl.cdiv(NC, TB), pl.cdiv(HW, TW))

    kernel = functools.partial(_gridmask_kernel, fillcolor=fillcolor)
    bytes_accessed = 2 * NC * HW * itemsize + keep_flat.size * 4

    out = pl.pallas_call(
        kernel,
        out_shape=jax.ShapeDtypeStruct((NC, HW), img.dtype),
        grid=grid,
        in_specs=[
            pl.BlockSpec((1, TW), lambda i, j: (0, j)),    # mask (VMEM-resident
                                                           # when TW == HW)
            pl.BlockSpec((TB, TW), lambda i, j: (i, j)),   # fused image slices
        ],
        out_specs=pl.BlockSpec((TB, TW), lambda i, j: (i, j)),
        compiler_params=pltpu.CompilerParams(
            dimension_semantics=("parallel", "parallel"),
            vmem_limit_bytes=vmem_limit_bytes,
        ),
        cost_estimate=pl.CostEstimate(
            flops=0, transcendentals=0, bytes_accessed=bytes_accessed),
    )(keep_flat, x)

    # TODO(synk): F.d_gridmask's exact target handling / per-call re-sampling
    # of d and mask rotation are unknown; target is returned unchanged and d
    # is treated as static (masking is spatial-only, as in reference GridMask).
    return out.reshape(N, C, H, W), target


def _reference(img, st, d, l, mode, fillcolor):
    H, W = img.shape[-2:]
    rows = jnp.arange(H)[:, None]
    cols = jnp.arange(W)[None, :]
    stripe = (jnp.mod(rows - st[0], d) < l) | (jnp.mod(cols - st[1], d) < l)
    keep = stripe if mode == 1 else ~stripe
    return jnp.where(keep[None, None], img, jnp.asarray(fillcolor, img.dtype))


if __name__ == "__main__":
    key = jax.random.PRNGKey(0)
    k_img, k_off, k_img2 = jax.random.split(key, 3)

    # Case 1: small image, full-width blocks.
    N, C, H, W = 2, 4, 16, 16
    img = jax.random.normal(k_img, (N, C, H, W), dtype=jnp.float32)
    target = jnp.arange(N, dtype=jnp.int32)  # dummy labels
    d, r, mode, fillcolor = 4, 0.5, 1, 0.0

    out_img, out_tgt = dynamic_gridmask(
        img, target, d=d, r=r, mode=mode, fillcolor=fillcolor, key=k_off
    )
    jax.block_until_ready(out_img)
    jax.block_until_ready(out_tgt)

    st = jax.random.randint(k_off, (2,), 0, d, dtype=jnp.int32)
    l = int(d * r + 0.5)
    ref = _reference(img, st, d, l, mode, fillcolor)
    assert jnp.allclose(out_img, ref), "case 1: mismatch vs reference"
    assert jnp.array_equal(out_tgt, target), "case 1: target should pass through"

    # Case 2: force the column-tiled path (tiny block budget) and mode=0.
    H2, W2 = 32, 32
    img2 = jax.random.normal(k_img2, (N, C, H2, W2), dtype=jnp.float32)
    out_img2, out_tgt2 = dynamic_gridmask(
        img2, target, d=8, r=0.25, mode=0, fillcolor=1.5, key=k_off,
        block_bytes=1024,
    )
    jax.block_until_ready(out_img2)

    st2 = jax.random.randint(k_off, (2,), 0, 8, dtype=jnp.int32)
    l2 = int(8 * 0.25 + 0.5)
    ref2 = _reference(img2, st2, 8, l2, 0, 1.5)
    assert jnp.allclose(out_img2, ref2), "case 2: mismatch vs reference"
    assert jnp.array_equal(out_tgt2, target), "case 2: target should pass through"

    print("KERNEL_OK")
</pallas_src>

<mosaic_0001>
module attributes {stable_mosaic.version = 11 : i64} {
  func.func @_gridmask_kernel(%arg0: i32, %arg1: i32, %arg2: memref<1x256xi32, #tpu.memory_space<vmem>>, %arg3: memref<8x256xf32, #tpu.memory_space<vmem>>, %arg4: memref<8x256xf32, #tpu.memory_space<vmem>>) attributes {dimension_semantics = [#tpu.dimension_semantics<parallel>, #tpu.dimension_semantics<parallel>], iteration_bounds = array<i64: 1, 1>, scalar_prefetch = 0 : i64, scratch_operands = 0 : i64, tpu.core_type = #tpu.core_type<tc>, window_params = [{transform_indices = @transform_0, window_bounds = array<i64: 1, 256>}, {transform_indices = @transform_1, window_bounds = array<i64: 8, 256>}, {transform_indices = @transform_2, window_bounds = array<i64: 8, 256>}]} {
    %c0 = arith.constant 0 : index
    %c0_0 = arith.constant 0 : index
    %0 = vector.load %arg2[%c0, %c0_0] : memref<1x256xi32, #tpu.memory_space<vmem>>, vector<1x256xi32>
    %c0_i32 = arith.constant 0 : i32
    %1 = vector.broadcast %c0_i32 : i32 to vector<1x256xi32>
    %2 = arith.cmpi ne, %0, %1 : vector<1x256xi32>
    %c0_1 = arith.constant 0 : index
    %c0_2 = arith.constant 0 : index
    %3 = vector.load %arg3[%c0_1, %c0_2] : memref<8x256xf32, #tpu.memory_space<vmem>>, vector<8x256xf32>
    %cst = arith.constant 0.000000e+00 : f32
    %4 = vector.shape_cast %2 : vector<1x256xi1> to vector<1x256xi1>
    %5 = vector.broadcast %4 : vector<1x256xi1> to vector<8x256xi1>
    %6 = vector.broadcast %cst : f32 to vector<8x256xf32>
    %7 = arith.select %5, %3, %6 : vector<8x256xi1>, vector<8x256xf32>
    %c0_3 = arith.constant 0 : index
    %c0_4 = arith.constant 0 : index
    %8 = vector.load %arg4[%c0_3, %c0_4] : memref<8x256xf32, #tpu.memory_space<vmem>>, vector<8x256xf32>
    tpu.vector_store %arg4[%c0_3, %c0_4], %7 {strides = array<i32>} : memref<8x256xf32, #tpu.memory_space<vmem>>, vector<8x256xf32>,
    return
  }
  func.func @transform_0(%arg0: i32, %arg1: i32) -> (i32, i32) {
    %c0_i32 = arith.constant 0 : i32
    %c0_i32_0 = arith.constant 0 : i32
    return %c0_i32, %arg1 : i32, i32
  }
  func.func @transform_1(%arg0: i32, %arg1: i32) -> (i32, i32) {
    %c0_i32 = arith.constant 0 : i32
    return %arg0, %arg1 : i32, i32
  }
  func.func @transform_2(%arg0: i32, %arg1: i32) -> (i32, i32) {
    %c0_i32 = arith.constant 0 : i32
    return %arg0, %arg1 : i32, i32
  }
}

</mosaic_0001>

<bundles_post_ra>
// kernel: tpu_custom_call.1
= control target key start
LH: loop header
LB: loop body
LE: loop exit
PB: predicated region body
PF: predicated region fallthrough
CT: control target
= control target key end

     0   :  { %7 = vsyncpa [#allocation3], 0  ;;  %s202_s0 = inlined_call_operand.hbm [shape: s32[1,256], index: 0, kind: input, shape index: {}]   ;;  %s203_s1 = inlined_call_operand.hbm [shape: f32[8,256], index: 1, kind: input, shape index: {}]   ;;  %s204_s2 = inlined_call_operand.hbm [shape: f32[8,256], index: 2, kind: output, shape index: {}]  }
   0x1   :  { %8 = vsyncpa [#allocation6], 0 }
   0x2   :  { %9 = vsyncpa [#allocation4], 0  ;;  %s147_s9 = smov [#allocation2]   ;;  %s148_s11 = smov [#allocation5]  }
   0x3   :  { %s16_s10 = sshll.u32 %s147_s9, 4  ;;  %s26_s12 = sshll.u32 %s148_s11, 4  ;;  %s17_s10 = int_to_ptr.vmem [resolvable:$true] %s16_s10  ;;  %s27_s12 = int_to_ptr.vmem [resolvable:$true] %s26_s12 }
   0x4   :  { %s75_s15 = scalar_lea.hbm %s202_s0, 32 }
   0x5   :  { %p76_p0 = scmp.ne.s32.totalorder %s202_s0, %s75_s15  ;;  %p79_p1 = scmp.lt.u32.totalorder %s75_s15, %s202_s0 }
   0x7   :  { %p81_p2 = pnand %p79_p1, %p76_p0 }
   0x9   :  { %84 = shalt.err (!%p81_p2)
}
   0xa   :  { %s85_s20 = scalar_lea.vmem %s17_s10, 32  ;;  %p90_p4 = scmp.lt.s32.totalorder %s17_s10, %s17_s10 }
   0xb   :  { %p86_p3 = scmp.ne.s32.totalorder %s17_s10, %s85_s20  ;;  %p91_p5 = scmp.lt.s32.totalorder %s85_s20, %s85_s20 }
   0xd   :  { %p92_p6 = por %p91_p5, %p90_p4 }
   0xf   :  { %p93_p7 = pnand %p92_p6, %p86_p3 }
  0x11   :  { %96 = shalt.err (!%p93_p7)
}
  0x12   :  { %19 = dma.hbm_to_vmem [thread:$0]  %s202_s0, 32, %s17_s10, [#allocation3]  }
  0x13   :  { %s97_s25 = scalar_lea.hbm %s203_s1, 256 }
  0x14   :  { %p98_p8 = scmp.ne.s32.totalorder %s203_s1, %s97_s25  ;;  %p101_p9 = scmp.lt.u32.totalorder %s97_s25, %s203_s1 }
  0x16   :  { %p103_p10 = pnand %p101_p9, %p98_p8 }
  0x18   :  { %106 = shalt.err (!%p103_p10)
}
  0x19   :  { %s107_s30 = scalar_lea.vmem %s27_s12, 256  ;;  %p112_p12 = scmp.lt.s32.totalorder %s27_s12, %s27_s12 }
  0x1a   :  { %p108_p11 = scmp.ne.s32.totalorder %s27_s12, %s107_s30  ;;  %p113_p13 = scmp.lt.s32.totalorder %s107_s30, %s107_s30 }
  0x1c   :  { %p114_p0 = por %p113_p13, %p112_p12 }
  0x1e   :  { %p115_p1 = pnand %p114_p0, %p108_p11 }
  0x20   :  { %118 = shalt.err (!%p115_p1)
}
  0x21   :  { %29 = dma.hbm_to_vmem [thread:$0]  %s203_s1, 256, %s27_s12, [#allocation6]  }
  0x22   :  { %141 = dma.done.wait [#allocation3], 32  }
  0x23   :  { %142 = vsyncadd [#allocation3], 4294967264 }
  0x24   :  { %143 = dma.done.wait [#allocation6], 256  }
  0x25   :  { %144 = vsyncadd [#allocation6], 4294967040  ;;  %v41_v0 = vlaneseq  ;;  %v36_v4 = vld [vmem:[#allocation2] sm:$0x3]  ;;  %v149_v5 = vmov 0   ;;  %s150_s4 = smov [#allocation7]  }
  0x26   :  { %vm37_vm0 = vcmp.ne.s32.totalorder %v36_v4, 0  ;;  %s61_s5 = sshll.u32 %s150_s4, 4  ;;  %v38_v7 = vld [vmem:[#allocation5] sm:$0xff]  ;;  %v39_v9 = vld [vmem:[#allocation5 + $0x8] sm:$0xff]  ;;  %s62_s5 = int_to_ptr.vmem [resolvable:$true] %s61_s5 }
  0x27   :  { %v42_v1 = vshrl.u32 %v41_v0, 7  ;;  %v40_v6 = vsel %vm37_vm0, 1, %v149_v5  ;;  %s119_s1 = scalar_lea.vmem %s62_s5, 256  ;;  %p124_p3 = scmp.lt.s32.totalorder %s62_s5, %s62_s5 }
  0x28   :  { %p120_p2 = scmp.ne.s32.totalorder %s62_s5, %s119_s1  ;;  %p125_p4 = scmp.lt.s32.totalorder %s119_s1, %s119_s1 }
  0x29   :  { %v43_v2 = vsub.s32 0, %v42_v1  ;;  %v47_v3 = vsub.s32 1, %v42_v1 }
  0x2a   :  { %p126_p5 = por %p125_p4, %p124_p3 }
  0x2b   :  { %v44_v8 = vrot.slane %v40_v6, %v43_v2  ;;  %v48_v10 = vrot.slane %v40_v6, %v47_v3 }
  0x2c   :  { %p127_p6 = pnand %p126_p5, %p120_p2 }
  0x2d   :  { %vm49_vm1 = vcmp.eq.s32.totalorder %v44_v8, 1  ;;  %vm50_vm2 = vcmp.eq.s32.totalorder %v48_v10, 1 }
  0x2e   :  { %v51_v11 = vsel %vm49_vm1, %v38_v7, 0.0  ;;  %v52_v12 = vsel %vm50_vm2, %v39_v9, 0.0 }
  0x2f   :  { %53 = vst [vmem:[#allocation7] sm:$0xff] %v51_v11  ;;  %54 = vst [vmem:[#allocation7 + $0x8] sm:$0xff] %v52_v12 }
  0x30   :  { %130 = shalt.err (!%p127_p6)
}
  0x31   :  { %s131_s8 = scalar_lea.hbm %s204_s2, 256 }
  0x32   :  { %p132_p7 = scmp.ne.s32.totalorder %s204_s2, %s131_s8  ;;  %p135_p8 = scmp.lt.u32.totalorder %s131_s8, %s204_s2 }
  0x34   :  { %p137_p9 = pnand %p135_p8, %p132_p7 }
  0x36   :  { %140 = shalt.err (!%p137_p9)
}
  0x37   :  { %64 = dma.vmem_to_hbm [thread:$0]  %s62_s5, 256, %s204_s2, [#allocation4]  }
  0x38   :  { %145 = dma.done.wait [#allocation4], 256  }
  0x39   :  { %146 = vsyncadd [#allocation4], 4294967040 }
  0x3a   :  { %68 = vsyncpa [#allocation3], 1 }
  0x3b   :  { %69 = vsyncpa [#allocation6], 1 }
  0x3c   :  { %70 = vsyncpa [#allocation4], 1 }

</bundles_post_ra>
